<compile_context>
chip_gen: v7x
topology: tpu7x:2x2x1
jax: 0.10.0
libtpu: 0.0.40
codegen_flags: <defaults>
</compile_context>

<pallas_src>
import jax
import jax.numpy as jnp
from jax.experimental import pallas as pl
from jax.experimental.pallas import tpu as pltpu

LANE = 128      # vreg lane width
SUBLANE = 8     # vreg sublane count (f32)


def _round_up(x, m):
    return ((x + m - 1) // m) * m


def _dqn_kernel(x_ref, w1_ref, b1_ref, w2_ref, b2_ref, w3_ref, b3_ref, out_ref):
    # One batch tile per grid step. Weights/biases have constant index_maps so
    # they are fetched once and stay resident; only the x/out tiles stream.
    # Matmul operands may be bf16; accumulation (preferred_element_type),
    # bias add and ReLU are f32.
    x = x_ref[...]
    h1 = jnp.dot(x, w1_ref[...], preferred_element_type=jnp.float32) + b1_ref[...]
    h1 = jnp.maximum(h1, 0.0)
    h2 = jnp.dot(h1.astype(w2_ref.dtype), w2_ref[...],
                 preferred_element_type=jnp.float32) + b2_ref[...]
    h2 = jnp.maximum(h2, 0.0)
    out_ref[...] = (jnp.dot(h2.astype(w3_ref.dtype), w3_ref[...],
                            preferred_element_type=jnp.float32)
                    + b3_ref[...]).astype(out_ref.dtype)


def dqn_forward(x, params, *, operand_dtype=jnp.bfloat16, block_batch=256):
    """Forward pass of DQNNetwork.

    params: dict w1,b1,w2,b2,w3,b3 with w* stored as (in, out) (transpose of
    torch's (out, in), so y = x @ W + b matches nn.Linear) and b* as (1, out).
    operand_dtype: dtype of the MXU operands (bf16 for v6e/v7x throughput,
    f32 for exact results). Accumulation is always f32.
    """
    w1, b1, w2, b2, w3, b3 = (params["w1"], params["b1"], params["w2"],
                              params["b2"], params["w3"], params["b3"])
    batch, in_size = x.shape
    hid_size = w1.shape[1]
    out_size = w3.shape[1]

    # Lane-pad feature dims, sublane-pad batch; zero padding is exact for this
    # MLP (zero weight rows/cols contribute nothing, padded rows/cols sliced off).
    in_p = _round_up(in_size, LANE)
    hid_p = _round_up(hid_size, LANE)
    out_p = _round_up(out_size, LANE)

    tb = _round_up(min(block_batch, _round_up(batch, SUBLANE)), SUBLANE)
    batch_p = _round_up(batch, tb)
    grid = (batch_p // tb,)

    def pad2(a, rows, cols, dtype):
        return jnp.pad(a, ((0, rows - a.shape[0]), (0, cols - a.shape[1]))).astype(dtype)

    x_p = pad2(x, batch_p, in_p, operand_dtype)
    w1_p = pad2(w1, in_p, hid_p, operand_dtype)
    w2_p = pad2(w2, hid_p, hid_p, operand_dtype)
    w3_p = pad2(w3, hid_p, out_p, operand_dtype)
    b1_p = pad2(b1, 1, hid_p, jnp.float32)
    b2_p = pad2(b2, 1, hid_p, jnp.float32)
    b3_p = pad2(b3, 1, out_p, jnp.float32)

    # Constant index_map -> block fetched once, stays VMEM-resident across grid.
    resident = lambda a: pl.BlockSpec(a.shape, lambda i: (0,) * a.ndim)

    out_padded = pl.pallas_call(
        _dqn_kernel,
        out_shape=jax.ShapeDtypeStruct((batch_p, out_p), jnp.float32),
        grid=grid,
        in_specs=[
            pl.BlockSpec((tb, in_p), lambda i: (i, 0)),   # streamed batch tile
            resident(w1_p), resident(b1_p),
            resident(w2_p), resident(b2_p),
            resident(w3_p), resident(b3_p),
        ],
        out_specs=pl.BlockSpec((tb, out_p), lambda i: (i, 0)),
        compiler_params=pltpu.CompilerParams(
            dimension_semantics=("parallel",),            # megacore on v7x
        ),
    )(x_p, w1_p, b1_p, w2_p, b2_p, w3_p, b3_p)

    return out_padded[:batch, :out_size]


def init_params(key, input_size, hidden_size, output_size):
    """Deterministic PyTorch-style init: U(-1/sqrt(fan_in), 1/sqrt(fan_in))."""
    def linear(k, fan_in, fan_out):
        kw, kb = jax.random.split(k)
        bound = 1.0 / jnp.sqrt(fan_in)
        # stored as (in, out) == transpose of torch's (out, in)
        w = jax.random.uniform(kw, (fan_in, fan_out), jnp.float32, -bound, bound)
        b = jax.random.uniform(kb, (1, fan_out), jnp.float32, -bound, bound)
        return w, b

    k1, k2, k3 = jax.random.split(key, 3)
    w1, b1 = linear(k1, input_size, hidden_size)
    w2, b2 = linear(k2, hidden_size, hidden_size)
    w3, b3 = linear(k3, hidden_size, output_size)
    return {"w1": w1, "b1": b1, "w2": w2, "b2": b2, "w3": w3, "b3": b3}


def reference_forward(x, p):
    h1 = jnp.maximum(x @ p["w1"] + p["b1"], 0.0)
    h2 = jnp.maximum(h1 @ p["w2"] + p["b2"], 0.0)
    return h2 @ p["w3"] + p["b3"]


if __name__ == "__main__":
    key = jax.random.PRNGKey(0)
    k_x, k_p = jax.random.split(key)

    # Small shapes consistent with the module (real DQN use: batch 256-1024).
    batch, input_size, hidden_size, output_size = 32, 16, 32, 4
    x = jax.random.normal(k_x, (batch, input_size), jnp.float32)
    params = init_params(k_p, input_size, hidden_size, output_size)

    ref = reference_forward(x, params)

    # Exact path (f32 operands) — tight tolerance.
    out_f32 = dqn_forward(x, params, operand_dtype=jnp.float32)
    jax.block_until_ready(out_f32)
    assert out_f32.shape == (batch, output_size)
    assert jnp.allclose(out_f32, ref, atol=1e-5, rtol=1e-5), "f32 mismatch vs reference"

    # Fast path (bf16 MXU operands, f32 accumulate) — bf16-level tolerance.
    out_bf16 = dqn_forward(x, params)
    jax.block_until_ready(out_bf16)
    assert out_bf16.shape == (batch, output_size)
    assert jnp.allclose(out_bf16, ref, atol=5e-2, rtol=5e-2), "bf16 mismatch vs reference"

    print("KERNEL_OK")
</pallas_src>

<mosaic_0001>
module attributes {stable_mosaic.version = 11 : i64} {
  func.func @_dqn_kernel(%arg0: i32, %arg1: memref<32x128xf32, #tpu.memory_space<vmem>>, %arg2: memref<128x128xf32, #tpu.memory_space<vmem>>, %arg3: memref<1x128xf32, #tpu.memory_space<vmem>>, %arg4: memref<128x128xf32, #tpu.memory_space<vmem>>, %arg5: memref<1x128xf32, #tpu.memory_space<vmem>>, %arg6: memref<128x128xf32, #tpu.memory_space<vmem>>, %arg7: memref<1x128xf32, #tpu.memory_space<vmem>>, %arg8: memref<32x128xf32, #tpu.memory_space<vmem>>) attributes {dimension_semantics = [#tpu.dimension_semantics<parallel>], iteration_bounds = array<i64: 1>, scalar_prefetch = 0 : i64, scratch_operands = 0 : i64, tpu.core_type = #tpu.core_type<tc>, window_params = [{transform_indices = @transform_0, window_bounds = array<i64: 32, 128>}, {pipeline_mode = #tpu.pipeline_mode<synchronous>, transform_indices = @transform_1, window_bounds = array<i64: 128, 128>}, {pipeline_mode = #tpu.pipeline_mode<synchronous>, transform_indices = @transform_2, window_bounds = array<i64: 1, 128>}, {pipeline_mode = #tpu.pipeline_mode<synchronous>, transform_indices = @transform_3, window_bounds = array<i64: 128, 128>}, {pipeline_mode = #tpu.pipeline_mode<synchronous>, transform_indices = @transform_4, window_bounds = array<i64: 1, 128>}, {pipeline_mode = #tpu.pipeline_mode<synchronous>, transform_indices = @transform_5, window_bounds = array<i64: 128, 128>}, {pipeline_mode = #tpu.pipeline_mode<synchronous>, transform_indices = @transform_6, window_bounds = array<i64: 1, 128>}, {transform_indices = @transform_7, window_bounds = array<i64: 32, 128>}]} {
    %c0 = arith.constant 0 : index
    %c0_0 = arith.constant 0 : index
    %0 = vector.load %arg1[%c0, %c0_0] : memref<32x128xf32, #tpu.memory_space<vmem>>, vector<32x128xf32>
    %c0_1 = arith.constant 0 : index
    %c0_2 = arith.constant 0 : index
    %1 = vector.load %arg2[%c0_1, %c0_2] : memref<128x128xf32, #tpu.memory_space<vmem>>, vector<128x128xf32>
    %cst = arith.constant dense<0.000000e+00> : vector<32x128xf32>
    %2 = tpu.matmul %0, %1, %cst {dimension_numbers = #tpu.dot_dimension_numbers<[1], [0], [0], [1], [0, 0, 1, 1], [], []>} : vector<32x128xf32>, vector<128x128xf32>, vector<32x128xf32> -> vector<32x128xf32>
    %c0_3 = arith.constant 0 : index
    %c0_4 = arith.constant 0 : index
    %3 = vector.load %arg3[%c0_3, %c0_4] : memref<1x128xf32, #tpu.memory_space<vmem>>, vector<1x128xf32>
    %4 = vector.broadcast %3 : vector<1x128xf32> to vector<32x128xf32>
    %5 = arith.addf %2, %4 : vector<32x128xf32>
    %cst_5 = arith.constant 0.000000e+00 : f32
    %6 = vector.broadcast %cst_5 : f32 to vector<32x128xf32>
    %7 = arith.maximumf %5, %6 : vector<32x128xf32>
    %c0_6 = arith.constant 0 : index
    %c0_7 = arith.constant 0 : index
    %8 = vector.load %arg4[%c0_6, %c0_7] : memref<128x128xf32, #tpu.memory_space<vmem>>, vector<128x128xf32>
    %cst_8 = arith.constant dense<0.000000e+00> : vector<32x128xf32>
    %9 = tpu.matmul %7, %8, %cst_8 {dimension_numbers = #tpu.dot_dimension_numbers<[1], [0], [0], [1], [0, 0, 1, 1], [], []>} : vector<32x128xf32>, vector<128x128xf32>, vector<32x128xf32> -> vector<32x128xf32>
    %c0_9 = arith.constant 0 : index
    %c0_10 = arith.constant 0 : index
    %10 = vector.load %arg5[%c0_9, %c0_10] : memref<1x128xf32, #tpu.memory_space<vmem>>, vector<1x128xf32>
    %11 = vector.broadcast %10 : vector<1x128xf32> to vector<32x128xf32>
    %12 = arith.addf %9, %11 : vector<32x128xf32>
    %cst_11 = arith.constant 0.000000e+00 : f32
    %13 = vector.broadcast %cst_11 : f32 to vector<32x128xf32>
    %14 = arith.maximumf %12, %13 : vector<32x128xf32>
    %c0_12 = arith.constant 0 : index
    %c0_13 = arith.constant 0 : index
    %15 = vector.load %arg6[%c0_12, %c0_13] : memref<128x128xf32, #tpu.memory_space<vmem>>, vector<128x128xf32>
    %cst_14 = arith.constant dense<0.000000e+00> : vector<32x128xf32>
    %16 = tpu.matmul %14, %15, %cst_14 {dimension_numbers = #tpu.dot_dimension_numbers<[1], [0], [0], [1], [0, 0, 1, 1], [], []>} : vector<32x128xf32>, vector<128x128xf32>, vector<32x128xf32> -> vector<32x128xf32>
    %c0_15 = arith.constant 0 : index
    %c0_16 = arith.constant 0 : index
    %17 = vector.load %arg7[%c0_15, %c0_16] : memref<1x128xf32, #tpu.memory_space<vmem>>, vector<1x128xf32>
    %18 = vector.broadcast %17 : vector<1x128xf32> to vector<32x128xf32>
    %19 = arith.addf %16, %18 : vector<32x128xf32>
    %c0_17 = arith.constant 0 : index
    %c0_18 = arith.constant 0 : index
    %20 = vector.load %arg8[%c0_17, %c0_18] : memref<32x128xf32, #tpu.memory_space<vmem>>, vector<32x128xf32>
    tpu.vector_store %arg8[%c0_17, %c0_18], %19 {strides = array<i32>} : memref<32x128xf32, #tpu.memory_space<vmem>>, vector<32x128xf32>,
    return
  }
  func.func @transform_0(%arg0: i32) -> (i32, i32) {
    %c0_i32 = arith.constant 0 : i32
    %c0_i32_0 = arith.constant 0 : i32
    return %arg0, %c0_i32 : i32, i32
  }
  func.func @transform_1(%arg0: i32) -> (i32, i32) {
    %c0_i32 = arith.constant 0 : i32
    %c0_i32_0 = arith.constant 0 : i32
    %c0_i32_1 = arith.constant 0 : i32
    return %c0_i32, %c0_i32_0 : i32, i32
  }
  func.func @transform_2(%arg0: i32) -> (i32, i32) {
    %c0_i32 = arith.constant 0 : i32
    %c0_i32_0 = arith.constant 0 : i32
    %c0_i32_1 = arith.constant 0 : i32
    return %c0_i32, %c0_i32_0 : i32, i32
  }
  func.func @transform_3(%arg0: i32) -> (i32, i32) {
    %c0_i32 = arith.constant 0 : i32
    %c0_i32_0 = arith.constant 0 : i32
    %c0_i32_1 = arith.constant 0 : i32
    return %c0_i32, %c0_i32_0 : i32, i32
  }
  func.func @transform_4(%arg0: i32) -> (i32, i32) {
    %c0_i32 = arith.constant 0 : i32
    %c0_i32_0 = arith.constant 0 : i32
    %c0_i32_1 = arith.constant 0 : i32
    return %c0_i32, %c0_i32_0 : i32, i32
  }
  func.func @transform_5(%arg0: i32) -> (i32, i32) {
    %c0_i32 = arith.constant 0 : i32
    %c0_i32_0 = arith.constant 0 : i32
    %c0_i32_1 = arith.constant 0 : i32
    return %c0_i32, %c0_i32_0 : i32, i32
  }
  func.func @transform_6(%arg0: i32) -> (i32, i32) {
    %c0_i32 = arith.constant 0 : i32
    %c0_i32_0 = arith.constant 0 : i32
    %c0_i32_1 = arith.constant 0 : i32
    return %c0_i32, %c0_i32_0 : i32, i32
  }
  func.func @transform_7(%arg0: i32) -> (i32, i32) {
    %c0_i32 = arith.constant 0 : i32
    %c0_i32_0 = arith.constant 0 : i32
    return %arg0, %c0_i32 : i32, i32
  }
}

</mosaic_0001>

<bundles_post_ra>
// kernel: tpu_custom_call.1
= control target key start
LH: loop header
LB: loop body
LE: loop exit
PB: predicated region body
PF: predicated region fallthrough
CT: control target
= control target key end

     0   :  { %12 = vsyncpa [#allocation3], 0  ;;  %s1000_s0 = inlined_call_operand.hbm [shape: f32[32,128], index: 0, kind: input, shape index: {}]   ;;  %s1001_s1 = inlined_call_operand.hbm [shape: f32[128,128], index: 1, kind: input, shape index: {}]   ;;  %s1002_s2 = inlined_call_operand.vmem [shape: f32[1,128], index: 2, kind: input, shape index: {}]   ;;  %s1003_s3 = inlined_call_operand.hbm [shape: f32[128,128], index: 3, kind: input, shape index: {}]   ;;  %s1004_s4 = inlined_call_operand.vmem [shape: f32[1,128], index: 4, kind: input, shape index: {}]   ;;  %s1005_s5 = inlined_call_operand.hbm [shape: f32[128,128], index: 5, kind: input, shape index: {}]   ;;  %s1006_s6 = inlined_call_operand.vmem [shape: f32[1,128], index: 6, kind: input, shape index: {}]   ;;  %s1007_s7 = inlined_call_operand.hbm [shape: f32[32,128], index: 7, kind: output, shape index: {}]  }
   0x1   :  { %13 = vsyncpa [#allocation6], 0 }
   0x2   :  { %14 = vsyncpa [#allocation9], 0 }
   0x3   :  { %15 = vsyncpa [#allocation4], 0  ;;  %s855_s24 = smov [#allocation5]   ;;  %s856_s26 = smov [#allocation2]  }
   0x4   :  { %s33_s25 = sshll.u32 %s855_s24, 4  ;;  %s21_s27 = sshll.u32 %s856_s26, 4  ;;  %s34_s25 = int_to_ptr.vmem [resolvable:$true] %s33_s25  ;;  %s902_s27 = int_to_ptr.vmem [resolvable:$true] %s21_s27 }
   0x5   :  { %s737_s30 = scalar_lea.hbm %s1001_s1, 2048 }
   0x6   :  { %p738_p0 = scmp.ne.s32.totalorder %s1001_s1, %s737_s30  ;;  %p741_p1 = scmp.lt.u32.totalorder %s737_s30, %s1001_s1 }
   0x8   :  { %p743_p2 = pnand %p741_p1, %p738_p0 }
   0xa   :  { %746 = shalt.err (!%p743_p2)
}
   0xb   :  { %s747_s12 = scalar_lea.vmem %s34_s25, 2048  ;;  %p752_p4 = scmp.lt.s32.totalorder %s34_s25, %s34_s25 }
   0xc   :  { %p748_p3 = scmp.ne.s32.totalorder %s34_s25, %s747_s12  ;;  %p753_p5 = scmp.lt.s32.totalorder %s747_s12, %s747_s12 }
   0xe   :  { %p754_p6 = por %p753_p5, %p752_p4 }
  0x10   :  { %p755_p7 = pnand %p754_p6, %p748_p3 }
  0x12   :  { %758 = shalt.err (!%p755_p7)
}
  0x13   :  { %s857_s13 = smov 128   ;;  %s858_s14 = smov 8  }
  0x14   :  { %39 = dma.hbm_to_vmem [thread:$0]  %s1001_s1, 2048, %s34_s25, [#allocation6], %s857_s13, %s857_s13, %s858_s14  }
  0x15   :  { %s759_s19 = scalar_lea.hbm %s1000_s0, 512 }
  0x16   :  { %p760_p8 = scmp.ne.s32.totalorder %s1000_s0, %s759_s19  ;;  %p763_p9 = scmp.lt.u32.totalorder %s759_s19, %s1000_s0 }
  0x18   :  { %p765_p10 = pnand %p763_p9, %p760_p8 }
  0x1a   :  { %768 = shalt.err (!%p765_p10)
}
  0x1b   :  { %s769_s24 = scalar_lea.vmem %s902_s27, 512  ;;  %p774_p12 = scmp.lt.s32.totalorder %s902_s27, %s902_s27 }
  0x1c   :  { %p770_p11 = scmp.ne.s32.totalorder %s902_s27, %s769_s24  ;;  %p775_p13 = scmp.lt.s32.totalorder %s769_s24, %s769_s24 }
  0x1e   :  { %p776_p0 = por %p775_p13, %p774_p12 }
  0x20   :  { %p777_p1 = pnand %p776_p0, %p770_p11 }
  0x22   :  { %780 = shalt.err (!%p777_p1)
}
  0x23   :  { %27 = dma.hbm_to_vmem [thread:$0]  %s1000_s0, 512, %s902_s27, [#allocation3], %s857_s13, %s857_s13, %s858_s14  }
  0x24   :  { %s859_s26 = smov [#allocation7]   ;;  %s860_s29 = smov [#allocation8]  }
  0x25   :  { %s47_s28 = sshll.u32 %s859_s26, 4  ;;  %s61_s30 = sshll.u32 %s860_s29, 4  ;;  %s48_s28 = int_to_ptr.vmem [resolvable:$true] %s47_s28  ;;  %s939_s30 = int_to_ptr.vmem [resolvable:$true] %s61_s30 }
  0x26   :  { %s781_s10 = scalar_lea.hbm %s1003_s3, 2048 }
  0x27   :  { %p782_p2 = scmp.ne.s32.totalorder %s1003_s3, %s781_s10  ;;  %p785_p3 = scmp.lt.u32.totalorder %s781_s10, %s1003_s3 }
  0x29   :  { %p787_p4 = pnand %p785_p3, %p782_p2 }
  0x2b   :  { %790 = shalt.err (!%p787_p4)
}
  0x2c   :  { %s791_s0 = scalar_lea.vmem %s48_s28, 2048  ;;  %p796_p6 = scmp.lt.s32.totalorder %s48_s28, %s48_s28 }
  0x2d   :  { %p792_p5 = scmp.ne.s32.totalorder %s48_s28, %s791_s0  ;;  %p797_p7 = scmp.lt.s32.totalorder %s791_s0, %s791_s0 }
  0x2f   :  { %p798_p8 = por %p797_p7, %p796_p6 }
  0x31   :  { %p799_p9 = pnand %p798_p8, %p792_p5 }
  0x33   :  { %802 = shalt.err (!%p799_p9)
}
  0x34   :  { %53 = dma.hbm_to_vmem [thread:$0]  %s1003_s3, 2048, %s48_s28, [#allocation6], %s857_s13, %s857_s13, %s858_s14  }
  0x35   :  { %s803_s20 = scalar_lea.hbm %s1005_s5, 2048 }
  0x36   :  { %p804_p10 = scmp.ne.s32.totalorder %s1005_s5, %s803_s20  ;;  %p807_p11 = scmp.lt.u32.totalorder %s803_s20, %s1005_s5 }
  0x38   :  { %p809_p12 = pnand %p807_p11, %p804_p10 }
  0x3a   :  { %812 = shalt.err (!%p809_p12)
}
  0x3b   :  { %s813_s1 = scalar_lea.vmem %s939_s30, 2048  ;;  %p818_p0 = scmp.lt.s32.totalorder %s939_s30, %s939_s30 }
  0x3c   :  { %p814_p13 = scmp.ne.s32.totalorder %s939_s30, %s813_s1  ;;  %p819_p1 = scmp.lt.s32.totalorder %s813_s1, %s813_s1 }
  0x3e   :  { %p820_p2 = por %p819_p1, %p818_p0 }
  0x40   :  { %p821_p3 = pnand %p820_p2, %p814_p13 }
  0x42   :  { %824 = shalt.err (!%p821_p3)
}
  0x43   :  { %67 = dma.hbm_to_vmem [thread:$0]  %s1005_s5, 2048, %s939_s30, [#allocation9], %s857_s13, %s857_s13, %s858_s14  }
  0x44   :  { %847 = dma.done.wait [#allocation3], 512  }
  0x45   :  { %848 = vsyncadd [#allocation3], 4294966784 }
  0x46   :  { %849 = dma.done.wait [#allocation6], 4096  }
  0x47   :  { %850 = vsyncadd [#allocation6], 4294963200 }
  0x48   :  { %851 = dma.done.wait [#allocation9], 2048  }
  0x49   :  { %852 = vsyncadd [#allocation9], 4294965248  ;;  %v86_v0 = vld [vmem:[#allocation5] sm:$0xff]  ;;  %v87_v1 = vld [vmem:[#allocation5 + $0x8] sm:$0xff] }
  0x4a   :  { %v88_v2 = vld [vmem:[#allocation5 + $0x10] sm:$0xff]  ;;  %v618_v3 = vpack.c.bf16 %v87_v1, %v86_v0  ;;  %v89_v4 = vld [vmem:[#allocation5 + $0x18] sm:$0xff]  ;;  %v90_v6 = vld [vmem:[#allocation5 + $0x20] sm:$0xff] }
  0x4b   :  { %v622_v5 = vpack.c.bf16 %v89_v4, %v88_v2  ;;  %v91_v7 = vld [vmem:[#allocation5 + $0x28] sm:$0xff]  ;;  %v82_v9 = vld [vmem:[#allocation2] sm:$0xff]  ;;  %v92_v10 = vld [vmem:[#allocation5 + $0x30] sm:$0xff] }
  0x4c   :  { %619 = vmatprep.subr.bf16.mxu0 %v618_v3  ;;  %v626_v8 = vpack.c.bf16 %v91_v7, %v90_v6  ;;  %v93_v11 = vld [vmem:[#allocation5 + $0x38] sm:$0xff]  ;;  %536 = vmatprep.mubr.f32.mxu0 %v82_v9  ;;  %v198_v12 = vld [vmem:[#allocation7] sm:$0xff]  ;;  %v199_v13 = vld [vmem:[#allocation7 + $0x8] sm:$0xff] }
  0x4d   :  { %621 = vmatpush3.bf16.msra.mxu0 %v618_v3  ;;  %v200_v14 = vld [vmem:[#allocation7 + $0x10] sm:$0xff]  ;;  %v201_v15 = vld [vmem:[#allocation7 + $0x18] sm:$0xff]  ;;  %v650_v16 = vpack.c.bf16 %v199_v13, %v198_v12  ;;  %v630_v18 = vpack.c.bf16 %v93_v11, %v92_v10  ;;  %v202_v19 = vld [vmem:[#allocation7 + $0x20] sm:$0xff] }
  0x4e   :  { %623 = vmatprep.subr.bf16.mxu0 %v622_v5  ;;  %v654_v17 = vpack.c.bf16 %v201_v15, %v200_v14  ;;  %v203_v20 = vld [vmem:[#allocation7 + $0x28] sm:$0xff]  ;;  %v94_v21 = vld [vmem:[#allocation5 + $0x40] sm:$0xff]  ;;  %v204_v25 = vld [vmem:[#allocation7 + $0x30] sm:$0xff] }
  0x4f   :  { %v95_v22 = vld [vmem:[#allocation5 + $0x48] sm:$0xff]  ;;  %651 = vmatprep.subr.bf16.mxu1 %v650_v16  ;;  %v658_v23 = vpack.c.bf16 %v203_v20, %v202_v19  ;;  %v205_v26 = vld [vmem:[#allocation7 + $0x38] sm:$0xff]  ;;  %v96_v27 = vld [vmem:[#allocation5 + $0x50] sm:$0xff] }
  0x50   :  { %653 = vmatpush3.bf16.msra.mxu1 %v650_v16  ;;  %v634_v24 = vpack.c.bf16 %v95_v22, %v94_v21  ;;  %v97_v28 = vld [vmem:[#allocation5 + $0x58] sm:$0xff]  ;;  %v662_v29 = vpack.c.bf16 %v205_v26, %v204_v25  ;;  %v206_v31 = vld [vmem:[#allocation7 + $0x40] sm:$0xff]  ;;  %v207_v32 = vld [vmem:[#allocation7 + $0x48] sm:$0xff] }
  0x51   :  { %625 = vmatpush3.bf16.msra.mxu0 %v622_v5  ;;  %655 = vmatprep.subr.bf16.mxu1 %v654_v17  ;;  %v638_v30 = vpack.c.bf16 %v97_v28, %v96_v27  ;;  %v98_v33 = vld [vmem:[#allocation5 + $0x60] sm:$0xff]  ;;  %v99_v34 = vld [vmem:[#allocation5 + $0x68] sm:$0xff]  ;;  %v666_v35 = vpack.c.bf16 %v207_v32, %v206_v31  ;;  %v208_v37 = vld [vmem:[#allocation7 + $0x50] sm:$0xff] }
  0x52   :  { %627 = vmatprep.subr.bf16.mxu0 %v626_v8  ;;  %v642_v36 = vpack.c.bf16 %v99_v34, %v98_v33  ;;  %v209_v38 = vld [vmem:[#allocation7 + $0x58] sm:$0xff]  ;;  %v100_v39 = vld [vmem:[#allocation5 + $0x70] sm:$0xff]  ;;  %v210_v43 = vld [vmem:[#allocation7 + $0x60] sm:$0xff] }
  0x53   :  { %v101_v40 = vld [vmem:[#allocation5 + $0x78] sm:$0xff]  ;;  %v670_v41 = vpack.c.bf16 %v209_v38, %v208_v37  ;;  %v211_v44 = vld [vmem:[#allocation7 + $0x68] sm:$0xff]  ;;  %v84_v47 = vld [vmem:[#allocation2 + $0x10] sm:$0xff] }
  0x54   :  { %657 = vmatpush3.bf16.msra.mxu1 %v654_v17  ;;  %v646_v42 = vpack.c.bf16 %v101_v40, %v100_v39  ;;  %v674_v45 = vpack.c.bf16 %v211_v44, %v210_v43  ;;  %v83_v46 = vld [vmem:[#allocation2 + $0x8] sm:$0xff]  ;;  %v85_v48 = vld [vmem:[#allocation2 + $0x18] sm:$0xff]  ;;  %v212_v49 = vld [vmem:[#allocation7 + $0x70] sm:$0xff] }
  0x55   :  { %629 = vmatpush3.bf16.msra.mxu0 %v626_v8  ;;  %659 = vmatprep.subr.bf16.mxu1 %v658_v23  ;;  %v213_v50 = vld [vmem:[#allocation7 + $0x78] sm:$0xff]  ;;  %v310_v52 = vld [vmem:[#allocation8] sm:$0xff]  ;;  %v311_v53 = vld [vmem:[#allocation8 + $0x8] sm:$0xff] }
  0x56   :  { %631 = vmatprep.subr.bf16.mxu0 %v630_v18  ;;  %v678_v51 = vpack.c.bf16 %v213_v50, %v212_v49  ;;  %v312_v54 = vld [vmem:[#allocation8 + $0x10] sm:$0xff]  ;;  %v682_v55 = vpack.c.bf16 %v311_v53, %v310_v52  ;;  %v313_v56 = vld [vmem:[#allocation8 + $0x18] sm:$0xff]  ;;  %v314_v58 = vld [vmem:[#allocation8 + $0x20] sm:$0xff] }
  0x57   :  { %v686_v57 = vpack.c.bf16 %v313_v56, %v312_v54  ;;  %v315_v59 = vld [vmem:[#allocation8 + $0x28] sm:$0xff]  ;;  %v316_v61 = vld [vmem:[#allocation8 + $0x30] sm:$0xff]  ;;  %v317_v62 = vld [vmem:[#allocation8 + $0x38] sm:$0xff] }
  0x58   :  { %661 = vmatpush3.bf16.msra.mxu1 %v658_v23  ;;  %v690_v60 = vpack.c.bf16 %v315_v59, %v314_v58  ;;  %v694_v63 = vpack.c.bf16 %v317_v62, %v316_v61  ;;  %v318_v0 = vld [vmem:[#allocation8 + $0x40] sm:$0xff]  ;;  %v319_v1 = vld [vmem:[#allocation8 + $0x48] sm:$0xff]  ;;  %v320_v3 = vld [vmem:[#allocation8 + $0x50] sm:$0xff] }
  0x59   :  { %633 = vmatpush3.bf16.msra.mxu0 %v630_v18  ;;  %663 = vmatprep.subr.bf16.mxu1 %v662_v29  ;;  %v698_v2 = vpack.c.bf16 %v319_v1, %v318_v0  ;;  %v321_v4 = vld [vmem:[#allocation8 + $0x58] sm:$0xff]  ;;  %v322_v6 = vld [vmem:[#allocation8 + $0x60] sm:$0xff]  ;;  %v323_v7 = vld [vmem:[#allocation8 + $0x68] sm:$0xff] }
  0x5a   :  { %635 = vmatprep.subr.bf16.mxu0 %v634_v24  ;;  %v702_v5 = vpack.c.bf16 %v321_v4, %v320_v3  ;;  %v706_v8 = vpack.c.bf16 %v323_v7, %v322_v6  ;;  %v441_v9 = vld [vmem:[%s1002_s2] ss:$0 sm:$0xff]  ;;  %v324_v22 = vld [vmem:[#allocation8 + $0x70] sm:$0xff]  ;;  %v325_v23 = vld [vmem:[#allocation8 + $0x78] sm:$0xff] }
  0x5b   :  { %v442_v25 = vld [vmem:[%s1004_s4] ss:$0 sm:$0xff]  ;;  %s861_s4 = smov [#allocation10]  }
  0x5c   :  { %665 = vmatpush3.bf16.msra.mxu1 %v662_v29  ;;  %v443_v38 = vld [vmem:[%s1006_s6] ss:$0 sm:$0xff]  ;;  %s427_s8 = sshll.u32 %s861_s4, 4  ;;  %s428_s8 = int_to_ptr.vmem [resolvable:$true] %s427_s8 }
  0x5d   :  { %637 = vmatpush3.bf16.msra.mxu0 %v634_v24  ;;  %667 = vmatprep.subr.bf16.mxu1 %v666_v35  ;;  %v710_v24 = vpack.c.bf16 %v325_v23, %v324_v22  ;;  %s825_s9 = scalar_lea.vmem %s428_s8, 512  ;;  %p830_p5 = scmp.lt.s32.totalorder %s428_s8, %s428_s8 }
  0x5e   :  { %639 = vmatprep.subr.bf16.mxu0 %v638_v30  ;;  %p826_p4 = scmp.ne.s32.totalorder %s428_s8, %s825_s9  ;;  %p831_p6 = scmp.lt.s32.totalorder %s825_s9, %s825_s9 }
  0x60   :  { %669 = vmatpush3.bf16.msra.mxu1 %v666_v35  ;;  %p832_p7 = por %p831_p6, %p830_p5 }
  0x61   :  { %641 = vmatpush3.bf16.msra.mxu0 %v638_v30  ;;  %671 = vmatprep.subr.bf16.mxu1 %v670_v41 }
  0x62   :  { %643 = vmatprep.subr.bf16.mxu0 %v642_v36  ;;  %p833_p8 = pnand %p832_p7, %p826_p4 }
  0x64   :  { %673 = vmatpush3.bf16.msra.mxu1 %v670_v41 }
  0x65   :  { %645 = vmatpush3.bf16.msra.mxu0 %v642_v36  ;;  %675 = vmatprep.subr.bf16.mxu1 %v674_v45 }
  0x66   :  { %647 = vmatprep.subr.bf16.mxu0 %v646_v42 }
  0x68   :  { %677 = vmatpush3.bf16.msra.mxu1 %v674_v45 }
  0x69   :  { %649 = vmatpush3.bf16.msra.mxu0 %v646_v42  ;;  %679 = vmatprep.subr.bf16.mxu1 %v678_v51 }
  0x6a   :  { %683 = vmatprep.subr.bf16.mxu0 %v682_v55 }
  0x6c   :  { %537 = vmatmul.mubr.f32.vlgmr.msra.gmra.mrb[0].mxu0 %v83_v46  ;;  %681 = vmatpush3.bf16.msra.mxu1 %v678_v51 }
  0x6d   :  { %539 = vmatprep.mubr.f32.mxu0 %v84_v47  ;;  %714 = vmatprep.subr.bf16.mxu1 %v682_v55 }
  0x6e   :  { %685 = vmatpush3.bf16.msra.mxu0 %v682_v55 }
  0x6f   :  { %687 = vmatprep.subr.bf16.mxu0 %v686_v57 }
  0x70   :  { %540 = vmatmul.mubr.f32.gmra.mrb[2].mxu0 %v85_v48 }
  0x72   :  { %689 = vmatpush3.bf16.msra.mxu0 %v686_v57 }
  0x73   :  { %691 = vmatprep.subr.bf16.mxu0 %v690_v60 }
  0x76   :  { %693 = vmatpush3.bf16.msra.mxu0 %v690_v60 }
  0x77   :  { %695 = vmatprep.subr.bf16.mxu0 %v694_v63 }
  0x7a   :  { %697 = vmatpush3.bf16.msra.mxu0 %v694_v63 }
  0x7b   :  { %699 = vmatprep.subr.bf16.mxu0 %v698_v2 }
  0x7e   :  { %701 = vmatpush3.bf16.msra.mxu0 %v698_v2 }
  0x7f   :  { %703 = vmatprep.subr.bf16.mxu0 %v702_v5 }
  0x82   :  { %705 = vmatpush3.bf16.msra.mxu0 %v702_v5 }
  0x83   :  { %707 = vmatprep.subr.bf16.mxu0 %v706_v8 }
  0x86   :  { %709 = vmatpush3.bf16.msra.mxu0 %v706_v8 }
  0x87   :  { %711 = vmatprep.subr.bf16.mxu0 %v710_v24 }
  0x8a   :  { %713 = vmatpush3.bf16.msra.mxu0 %v710_v24 }
 0x13f   :  { %v538_v10 = vpop.f32.mrb[0].mxu0 }
 0x140   :  { %v181_v11 = vadd.f32 %v538_v10, %v441_v9  ;;  %v175_v12 = vpop.f32.mrb[1].mxu0 }
 0x141   :  { %v176_v13 = vadd.f32 %v441_v9, %v175_v12 }
 0x142   :  { %v195_v16 = vmax.f32 %v181_v11, 0.0 }
 0x143   :  { %v541_v14 = vpop.f32.mrb[2].mxu0  ;;  %v194_v15 = vmax.f32 %v176_v13, 0.0 }
 0x144   :  { %v191_v17 = vadd.f32 %v541_v14, %v441_v9  ;;  %v185_v18 = vpop.f32.mrb[3].mxu0 }
 0x145   :  { %v186_v19 = vadd.f32 %v441_v9, %v185_v18  ;;  %574 = vmatprep.mubr.f32.mxu1 %v194_v15 }
 0x146   :  { %575 = vmatmul.mubr.f32.vlgmr.msra.gmra.mrb[0].mxu1 %v195_v16  ;;  %v197_v21 = vmax.f32 %v191_v17, 0.0 }
 0x147   :  { %v196_v20 = vmax.f32 %v186_v19, 0.0  ;;  %722 = vmatpush3.bf16.msra.mxu1 %v682_v55 }
 0x148   :  { %715 = vmatprep.subr.bf16.mxu1 %v686_v57 }
 0x149   :  { %577 = vmatprep.mubr.f32.mxu1 %v196_v20 }
 0x14a   :  { %578 = vmatmul.mubr.f32.gmra.mrb[2].mxu1 %v197_v21 }
 0x14b   :  { %723 = vmatpush3.bf16.msra.mxu1 %v686_v57 }
 0x14c   :  { %716 = vmatprep.subr.bf16.mxu1 %v690_v60 }
 0x14f   :  { %724 = vmatpush3.bf16.msra.mxu1 %v690_v60 }
 0x150   :  { %717 = vmatprep.subr.bf16.mxu1 %v694_v63 }
 0x153   :  { %725 = vmatpush3.bf16.msra.mxu1 %v694_v63 }
 0x154   :  { %718 = vmatprep.subr.bf16.mxu1 %v698_v2 }
 0x157   :  { %726 = vmatpush3.bf16.msra.mxu1 %v698_v2 }
 0x158   :  { %719 = vmatprep.subr.bf16.mxu1 %v702_v5 }
 0x15b   :  { %727 = vmatpush3.bf16.msra.mxu1 %v702_v5 }
 0x15c   :  { %720 = vmatprep.subr.bf16.mxu1 %v706_v8 }
 0x15f   :  { %728 = vmatpush3.bf16.msra.mxu1 %v706_v8 }
 0x160   :  { %721 = vmatprep.subr.bf16.mxu1 %v710_v24 }
 0x163   :  { %729 = vmatpush3.bf16.msra.mxu1 %v710_v24 }
 0x219   :  { %v576_v26 = vpop.f32.mrb[0].mxu1 }
 0x21a   :  { %v293_v27 = vadd.f32 %v576_v26, %v442_v25  ;;  %v287_v28 = vpop.f32.mrb[1].mxu1 }
 0x21b   :  { %v288_v29 = vadd.f32 %v442_v25, %v287_v28 }
 0x21c   :  { %v307_v32 = vmax.f32 %v293_v27, 0.0 }
 0x21d   :  { %v306_v30 = vmax.f32 %v288_v29, 0.0  ;;  %v579_v31 = vpop.f32.mrb[2].mxu1 }
 0x21e   :  { %v303_v33 = vadd.f32 %v579_v31, %v442_v25  ;;  %v297_v34 = vpop.f32.mrb[3].mxu1 }
 0x21f   :  { %v298_v35 = vadd.f32 %v442_v25, %v297_v34  ;;  %612 = vmatprep.mubr.f32.mxu0 %v306_v30 }
 0x220   :  { %613 = vmatmul.mubr.f32.vlgmr.msra.gmra.mrb[4].mxu0 %v307_v32  ;;  %v309_v37 = vmax.f32 %v303_v33, 0.0 }
 0x221   :  { %v308_v36 = vmax.f32 %v298_v35, 0.0 }
 0x223   :  { %615 = vmatprep.mubr.f32.mxu1 %v308_v36 }
 0x224   :  { %616 = vmatmul.mubr.f32.vlgmr.msra.gmra.mrb[4].mxu1 %v309_v37 }
 0x2f3   :  { %v614_v39 = vpop.f32.mrb[4].mxu0 }
 0x2f4   :  { %v405_v40 = vadd.f32 %v614_v39, %v443_v38  ;;  %v399_v41 = vpop.f32.mrb[5].mxu0 }
 0x2f5   :  { %v400_v42 = vadd.f32 %v443_v38, %v399_v41 }
 0x2f6   :  { %419 = vst [vmem:[#allocation10 + $0x8] sm:$0xff] %v405_v40 }
 0x2f7   :  { %418 = vst [vmem:[#allocation10] sm:$0xff] %v400_v42  ;;  %v617_v43 = vpop.f32.mrb[4].mxu1 }
 0x2f8   :  { %v415_v44 = vadd.f32 %v617_v43, %v443_v38  ;;  %v409_v45 = vpop.f32.mrb[5].mxu1 }
 0x2f9   :  { %v410_v46 = vadd.f32 %v443_v38, %v409_v45 }
 0x2fa   :  { %421 = vst [vmem:[#allocation10 + $0x18] sm:$0xff] %v415_v44 }
 0x2fb   :  { %420 = vst [vmem:[#allocation10 + $0x10] sm:$0xff] %v410_v46 }
 0x2fc   :  { %836 = shalt.err (!%p833_p8)
}
 0x2fd   :  { %s837_s11 = scalar_lea.hbm %s1007_s7, 512 }
 0x2fe   :  { %p838_p9 = scmp.ne.s32.totalorder %s1007_s7, %s837_s11  ;;  %p841_p10 = scmp.lt.u32.totalorder %s837_s11, %s1007_s7 }
 0x300   :  { %p843_p11 = pnand %p841_p10, %p838_p9 }
 0x302   :  { %846 = shalt.err (!%p843_p11)
}
 0x303   :  { %433 = dma.vmem_to_hbm [thread:$0]  %s428_s8, 512, %s1007_s7, [#allocation4], %s857_s13, %s857_s13, %s858_s14  }
 0x304   :  { %853 = dma.done.wait [#allocation4], 512  }
 0x305   :  { %854 = vsyncadd [#allocation4], 4294966784 }
 0x306   :  { %437 = vsyncpa [#allocation3], 1 }
 0x307   :  { %438 = vsyncpa [#allocation6], 1 }
 0x308   :  { %439 = vsyncpa [#allocation9], 1 }
 0x309   :  { %440 = vsyncpa [#allocation4], 1 }

</bundles_post_ra>
